<compile_context>
chip_gen: v5e
topology: v5e:2x2
jax: 0.10.0
libtpu: 0.0.40
codegen_flags: <defaults>
</compile_context>

<pallas_src>
import jax
import jax.numpy as jnp
from jax.experimental import pallas as pl
from jax.experimental.pallas import tpu as pltpu


def _inception_aux_kernel(x_ref, w_ref, b_ref, o_ref, acc_ref):
    # x_ref: (TN, THW, C) native dtype   w_ref: (C, Kp) f32 (mean-scale folded)
    # b_ref: (1, Kp) f32                 o_ref: (TN, Kp)   acc_ref: (TN, C) f32
    r = pl.program_id(1)

    @pl.when(r == 0)
    def _():
        acc_ref[...] = jnp.zeros_like(acc_ref)

    # Spatial (sublane-axis) partial sum for this block, accumulated in f32.
    # Memory traffic stays in the input's native dtype; cast happens in vregs.
    acc_ref[...] += jnp.sum(x_ref[...].astype(jnp.float32), axis=1)

    @pl.when(r == pl.num_programs(1) - 1)
    def _():
        # 1x1 conv == FC: (TN, C) @ (C, Kp) on the MXU; the mean's 1/(H*W) is
        # already folded into w, so the accumulator holds plain sums.
        out = jnp.dot(acc_ref[...], w_ref[...],
                      preferred_element_type=jnp.float32)
        out = out + b_ref[...]
        o_ref[...] = out.astype(o_ref.dtype)


def _pick_tiles(N, HW, C, itemsize, budget_bytes):
    """Pick (tn, n_pad, thw, hw_pad) respecting the (8,128)/full-dim rules,
    preferring the fewest grid steps (one block if it fits the budget)."""
    row_bytes = max(1, HW * C * itemsize)          # one batch sample

    # 1) Whole problem in a single block -> single grid step.
    if N * row_bytes <= budget_bytes:
        return N, N, HW, HW

    # 2) Full spatial extent per block, tile the batch (multiple-of-8 tiles).
    max_tn = budget_bytes // row_bytes
    if max_tn >= 8:
        tn = min((max_tn // 8) * 8, 512)
        n_pad = ((N + tn - 1) // tn) * tn
        return tn, n_pad, HW, HW

    # 3) A single sample's spatial extent doesn't fit: tile HW as well.
    tn = min(N, 8)
    n_pad = ((N + tn - 1) // tn) * tn
    max_thw = budget_bytes // max(1, tn * C * itemsize)
    thw = max(8, (max_thw // 8) * 8)
    if thw >= HW:
        return tn, n_pad, HW, HW
    hw_pad = ((HW + thw - 1) // thw) * thw
    return tn, n_pad, thw, hw_pad


def inception_aux_forward(x_nchw, weight, bias, *, x_block_budget_bytes=4 << 20):
    """x_nchw: (N, C, H, W); weight: (K, C, 1, 1); bias: (K,) -> (N, K)."""
    N, C, H, W = x_nchw.shape
    K = weight.shape[0]
    HW = H * W
    itemsize = jnp.dtype(x_nchw.dtype).itemsize

    # Channels-last so C maps to lanes: (N, HW, C).
    x_flat = jnp.transpose(x_nchw, (0, 2, 3, 1)).reshape(N, HW, C)

    tn, n_pad, thw, hw_pad = _pick_tiles(N, HW, C, itemsize,
                                         x_block_budget_bytes)
    if n_pad != N or hw_pad != HW:
        # Zero padding is harmless for the spatial sum; padded batch rows are
        # sliced off below.
        x_flat = jnp.pad(x_flat, ((0, n_pad - N), (0, hw_pad - HW), (0, 0)))

    # Pad K up to a lane-dense 128 multiple; fold the mean's 1/(H*W) and the
    # f32 casts into the (tiny) weight/bias once, in the wrapper.
    Kp = max(128, ((K + 127) // 128) * 128)
    inv_hw = 1.0 / float(HW)
    w_ck = weight.reshape(K, C).T.astype(jnp.float32) * inv_hw     # (C, K)
    w_ck = jnp.pad(w_ck, ((0, 0), (0, Kp - K)))                    # (C, Kp)
    b_2d = jnp.pad(bias.astype(jnp.float32), (0, Kp - K)).reshape(1, Kp)

    grid = (n_pad // tn, hw_pad // thw)

    x_bytes = n_pad * hw_pad * C * itemsize
    cost = pl.CostEstimate(
        flops=2 * n_pad * C * Kp + n_pad * hw_pad * C,
        transcendentals=0,
        bytes_accessed=x_bytes + C * Kp * 4 + Kp * 4 + n_pad * Kp * itemsize,
    )

    out = pl.pallas_call(
        _inception_aux_kernel,
        out_shape=jax.ShapeDtypeStruct((n_pad, Kp), x_nchw.dtype),
        grid_spec=pltpu.PrefetchScalarGridSpec(
            num_scalar_prefetch=0,
            grid=grid,
            in_specs=[
                pl.BlockSpec((tn, thw, C), lambda i, r: (i, r, 0)),
                pl.BlockSpec((C, Kp), lambda i, r: (0, 0)),
                pl.BlockSpec((1, Kp), lambda i, r: (0, 0)),
            ],
            out_specs=pl.BlockSpec((tn, Kp), lambda i, r: (i, 0)),
            scratch_shapes=[pltpu.VMEM((tn, C), jnp.float32)],
        ),
        compiler_params=pltpu.CompilerParams(
            dimension_semantics=("parallel", "arbitrary"),
            vmem_limit_bytes=32 * 1024 * 1024,
        ),
        cost_estimate=cost,
    )(x_flat, w_ck, b_2d)

    return out[:N, :K]


def _reference(x_nchw, weight, bias):
    K = weight.shape[0]
    C = weight.shape[1]
    pooled = jnp.mean(x_nchw, axis=(2, 3))                          # (N, C)
    return pooled @ weight.reshape(K, C).T + bias                   # (N, K)


if __name__ == "__main__":
    key = jax.random.PRNGKey(0)
    k_x, k_w, k_b, k_x2 = jax.random.split(key, 4)

    N, C, H, W = 2, 4, 16, 16
    num_classes = 10

    x = jax.random.normal(k_x, (N, C, H, W), dtype=jnp.float32)
    # Deterministic synthetic Conv2d(C, num_classes, 1x1) parameters.
    weight = jax.random.normal(k_w, (num_classes, C, 1, 1), dtype=jnp.float32) * 0.1
    bias = jax.random.normal(k_b, (num_classes,), dtype=jnp.float32) * 0.1

    ref = _reference(x, weight, bias)

    # 1) Default path: whole problem in a single block / single grid step.
    out = inception_aux_forward(x, weight, bias)
    out = jax.block_until_ready(out)
    assert out.shape == (N, num_classes)
    assert jnp.allclose(out, ref, atol=1e-5, rtol=1e-5)

    # 2) Force the multi-step spatial-reduction path (accumulator across r).
    out_small = inception_aux_forward(x, weight, bias,
                                      x_block_budget_bytes=2048)
    out_small = jax.block_until_ready(out_small)
    assert jnp.allclose(out_small, ref, atol=1e-5, rtol=1e-5)

    # 3) Force the batch-tiling path (tn multiple of 8, padded batch rows).
    N2 = 12
    x2 = jax.random.normal(k_x2, (N2, C, H, W), dtype=jnp.float32)
    ref2 = _reference(x2, weight, bias)
    out2 = inception_aux_forward(x2, weight, bias,
                                 x_block_budget_bytes=9 * H * W * C * 4)
    out2 = jax.block_until_ready(out2)
    assert out2.shape == (N2, num_classes)
    assert jnp.allclose(out2, ref2, atol=1e-5, rtol=1e-5)

    print("KERNEL_OK")
</pallas_src>

<mosaic_0001>
module attributes {stable_mosaic.version = 11 : i64} {
  func.func @_inception_aux_kernel(%arg0: i32, %arg1: i32, %arg2: memref<2x256x4xf32, #tpu.memory_space<vmem>>, %arg3: memref<4x128xf32, #tpu.memory_space<vmem>>, %arg4: memref<1x128xf32, #tpu.memory_space<vmem>>, %arg5: memref<2x128xf32, #tpu.memory_space<vmem>>, %arg6: memref<2x4xf32, #tpu.memory_space<vmem>>) attributes {dimension_semantics = [#tpu.dimension_semantics<parallel>, #tpu.dimension_semantics<arbitrary>], iteration_bounds = array<i64: 1, 1>, scalar_prefetch = 0 : i64, scratch_operands = 1 : i64, tpu.core_type = #tpu.core_type<tc>, window_params = [{transform_indices = @transform_0, window_bounds = array<i64: 2, 256, 4>}, {pipeline_mode = #tpu.pipeline_mode<synchronous>, transform_indices = @transform_1, window_bounds = array<i64: 4, 128>}, {pipeline_mode = #tpu.pipeline_mode<synchronous>, transform_indices = @transform_2, window_bounds = array<i64: 1, 128>}, {transform_indices = @transform_3, window_bounds = array<i64: 2, 128>}]} {
    %c0_i32 = arith.constant 0 : i32
    %0 = arith.cmpi eq, %arg1, %c0_i32 : i32
    %1 = arith.extui %0 : i1 to i32
    %c0_i32_0 = arith.constant 0 : i32
    %2 = arith.cmpi ne, %1, %c0_i32_0 : i32
    scf.if %2 {
      %cst_9 = arith.constant 0.000000e+00 : f32
      %11 = vector.broadcast %cst_9 : f32 to vector<2x4xf32>
      %c0_10 = arith.constant 0 : index
      %c0_11 = arith.constant 0 : index
      %12 = vector.load %arg6[%c0_10, %c0_11] : memref<2x4xf32, #tpu.memory_space<vmem>>, vector<2x4xf32>
      tpu.vector_store %arg6[%c0_10, %c0_11], %11 {strides = array<i32>} : memref<2x4xf32, #tpu.memory_space<vmem>>, vector<2x4xf32>,
    } else {
    }
    %c0 = arith.constant 0 : index
    %c0_1 = arith.constant 0 : index
    %3 = vector.load %arg6[%c0, %c0_1] : memref<2x4xf32, #tpu.memory_space<vmem>>, vector<2x4xf32>
    %c0_2 = arith.constant 0 : index
    %c0_3 = arith.constant 0 : index
    %c0_4 = arith.constant 0 : index
    %4 = vector.load %arg2[%c0_2, %c0_3, %c0_4] : memref<2x256x4xf32, #tpu.memory_space<vmem>>, vector<2x256x4xf32>
    %cst = arith.constant dense<0.000000e+00> : vector<2x4xf32>
    %5 = vector.multi_reduction <add>, %4, %cst [1] : vector<2x256x4xf32> to vector<2x4xf32>
    %6 = arith.addf %3, %5 : vector<2x4xf32>
    %c0_5 = arith.constant 0 : index
    %c0_6 = arith.constant 0 : index
    %7 = vector.load %arg6[%c0_5, %c0_6] : memref<2x4xf32, #tpu.memory_space<vmem>>, vector<2x4xf32>
    tpu.vector_store %arg6[%c0_5, %c0_6], %6 {strides = array<i32>} : memref<2x4xf32, #tpu.memory_space<vmem>>, vector<2x4xf32>,
    %c0_i32_7 = arith.constant 0 : i32
    %8 = arith.cmpi eq, %arg1, %c0_i32_7 : i32
    %9 = arith.extui %8 : i1 to i32
    %c0_i32_8 = arith.constant 0 : i32
    %10 = arith.cmpi ne, %9, %c0_i32_8 : i32
    scf.if %10 {
      %c0_9 = arith.constant 0 : index
      %c0_10 = arith.constant 0 : index
      %11 = vector.load %arg6[%c0_9, %c0_10] : memref<2x4xf32, #tpu.memory_space<vmem>>, vector<2x4xf32>
      %c0_11 = arith.constant 0 : index
      %c0_12 = arith.constant 0 : index
      %12 = vector.load %arg3[%c0_11, %c0_12] : memref<4x128xf32, #tpu.memory_space<vmem>>, vector<4x128xf32>
      %cst_13 = arith.constant dense<0.000000e+00> : vector<2x128xf32>
      %13 = tpu.matmul %11, %12, %cst_13 {dimension_numbers = #tpu.dot_dimension_numbers<[1], [0], [0], [1], [0, 0, 1, 1], [], []>} : vector<2x4xf32>, vector<4x128xf32>, vector<2x128xf32> -> vector<2x128xf32>
      %c0_14 = arith.constant 0 : index
      %c0_15 = arith.constant 0 : index
      %14 = vector.load %arg4[%c0_14, %c0_15] : memref<1x128xf32, #tpu.memory_space<vmem>>, vector<1x128xf32>
      %15 = vector.broadcast %14 : vector<1x128xf32> to vector<2x128xf32>
      %16 = arith.addf %13, %15 : vector<2x128xf32>
      %c0_16 = arith.constant 0 : index
      %c0_17 = arith.constant 0 : index
      %17 = vector.load %arg5[%c0_16, %c0_17] : memref<2x128xf32, #tpu.memory_space<vmem>>, vector<2x128xf32>
      tpu.vector_store %arg5[%c0_16, %c0_17], %16 {strides = array<i32>} : memref<2x128xf32, #tpu.memory_space<vmem>>, vector<2x128xf32>,
    } else {
    }
    return
  }
  func.func @transform_0(%arg0: i32, %arg1: i32) -> (i32, i32, i32) {
    %c0_i32 = arith.constant 0 : i32
    %c0_i32_0 = arith.constant 0 : i32
    return %arg0, %arg1, %c0_i32 : i32, i32, i32
  }
  func.func @transform_1(%arg0: i32, %arg1: i32) -> (i32, i32) {
    %c0_i32 = arith.constant 0 : i32
    %c0_i32_0 = arith.constant 0 : i32
    %c0_i32_1 = arith.constant 0 : i32
    return %c0_i32, %c0_i32_0 : i32, i32
  }
  func.func @transform_2(%arg0: i32, %arg1: i32) -> (i32, i32) {
    %c0_i32 = arith.constant 0 : i32
    %c0_i32_0 = arith.constant 0 : i32
    %c0_i32_1 = arith.constant 0 : i32
    return %c0_i32, %c0_i32_0 : i32, i32
  }
  func.func @transform_3(%arg0: i32, %arg1: i32) -> (i32, i32) {
    %c0_i32 = arith.constant 0 : i32
    %c0_i32_0 = arith.constant 0 : i32
    return %arg0, %c0_i32 : i32, i32
  }
}

</mosaic_0001>

<bundles_post_ra>
// kernel: tpu_custom_call.1
= control target key start
LH: loop header
LB: loop body
LE: loop exit
PB: predicated region body
PF: predicated region fallthrough
CT: control target
= control target key end

     0   :  { %vm245_vm0 = vcmask 1043456   ;;  %vm19_vm1 = vcmask 25600   ;;  %v317_v2 = vmov 0.0   ;;  %vm86_vm2 = vcmask 31744   ;;  %s607_s0 = inlined_call_operand.vmem [shape: f32[2,256,4], index: 0, kind: input, shape index: {}]   ;;  %s608_s1 = inlined_call_operand.vmem [shape: f32[4,128], index: 1, kind: input, shape index: {}]   ;;  %s609_s2 = inlined_call_operand.vmem [shape: f32[1,128], index: 2, kind: input, shape index: {}]   ;;  %s610_s3 = inlined_call_operand.hbm [shape: f32[2,128], index: 3, kind: output, shape index: {}]  }
   0x1   :  { %v237_v0 = vld [vmem:[%s608_s1] sm:$0xf]  ;;  %20 = vst.msk [vmem:[#allocation2] sm:$0x3] %vm19_vm1, %v317_v2  ;;  %v23_v3 = vld [vmem:[%s607_s0 + $0x8] sm:$0xff]  ;;  %v24_v4 = vld [vmem:[%s607_s0 + $0x10] sm:$0xff] }
   0x2   :  { %v22_v1 = vld [vmem:[%s607_s0] sm:$0xff]  ;;  %286 = vmatpush.msk.msra.mxu0 %vm245_vm0, %v237_v0  ;;  %v25_v5 = vld [vmem:[%s607_s0 + $0x18] sm:$0xff]  ;;  %v88_v7 = vsel %vm86_vm2, %v23_v3, 0.0  ;;  %v90_v8 = vsel %vm86_vm2, %v24_v4, 0.0  ;;  %v27_v12 = vld [vmem:[%s607_s0 + $0x28] sm:$0xff] }
   0x3   :  { %v87_v6 = vsel %vm86_vm2, %v22_v1, 0.0  ;;  %v26_v9 = vld [vmem:[%s607_s0 + $0x20] sm:$0xff]  ;;  %v92_v11 = vsel %vm86_vm2, %v25_v5, 0.0  ;;  %v28_v15 = vld [vmem:[%s607_s0 + $0x30] sm:$0xff]  ;;  %v96_v17 = vsel %vm86_vm2, %v27_v12, 0.0  ;;  %v29_v18 = vld [vmem:[%s607_s0 + $0x38] sm:$0xff] }
   0x4   :  { %v89_v10 = vadd.f32 %v88_v7, %v87_v6  ;;  %v94_v14 = vsel %vm86_vm2, %v26_v9, 0.0  ;;  %v98_v20 = vsel %vm86_vm2, %v28_v15, 0.0  ;;  %v30_v21 = vld [vmem:[%s607_s0 + $0x40] sm:$0xff]  ;;  %v55_v24 = vld [vmem:[%s607_s0 + $0x108] sm:$0xff]  ;;  %v56_v25 = vld [vmem:[%s607_s0 + $0x110] sm:$0xff]  ;;  %v100_v27 = vsel %vm86_vm2, %v29_v18, 0.0 }
   0x5   :  { %v54_v22 = vld [vmem:[%s607_s0 + $0x100] sm:$0xff]  ;;  %v57_v26 = vld [vmem:[%s607_s0 + $0x118] sm:$0xff]  ;;  %v31_v29 = vld [vmem:[%s607_s0 + $0x48] sm:$0xff]  ;;  %v157_v31 = vsel %vm86_vm2, %v55_v24, 0.0  ;;  %v159_v32 = vsel %vm86_vm2, %v56_v25, 0.0  ;;  %v102_v34 = vsel %vm86_vm2, %v30_v21, 0.0 }
   0x6   :  { %v91_v13 = vadd.f32 %v90_v8, %v89_v10  ;;  %v156_v28 = vsel %vm86_vm2, %v54_v22, 0.0  ;;  %v58_v33 = vld [vmem:[%s607_s0 + $0x120] sm:$0xff]  ;;  %v32_v36 = vld [vmem:[%s607_s0 + $0x50] sm:$0xff]  ;;  %v161_v38 = vsel %vm86_vm2, %v57_v26, 0.0  ;;  %v59_v39 = vld [vmem:[%s607_s0 + $0x128] sm:$0xff]  ;;  %v104_v40 = vsel %vm86_vm2, %v31_v29, 0.0 }
   0x7   :  { %v158_v35 = vadd.f32 %v157_v31, %v156_v28  ;;  %v33_v42 = vld [vmem:[%s607_s0 + $0x58] sm:$0xff]  ;;  %v163_v44 = vsel %vm86_vm2, %v58_v33, 0.0  ;;  %v60_v45 = vld [vmem:[%s607_s0 + $0x130] sm:$0xff]  ;;  %v106_v46 = vsel %vm86_vm2, %v32_v36, 0.0  ;;  %v34_v48 = vld [vmem:[%s607_s0 + $0x60] sm:$0xff]  ;;  %v165_v50 = vsel %vm86_vm2, %v59_v39, 0.0 }
   0x8   :  { %v93_v16 = vadd.f32 %v92_v11, %v91_v13  ;;  %v61_v51 = vld [vmem:[%s607_s0 + $0x138] sm:$0xff]  ;;  %v108_v52 = vsel %vm86_vm2, %v33_v42, 0.0  ;;  %v35_v54 = vld [vmem:[%s607_s0 + $0x68] sm:$0xff]  ;;  %v167_v56 = vsel %vm86_vm2, %v60_v45, 0.0  ;;  %v62_v57 = vld [vmem:[%s607_s0 + $0x140] sm:$0xff]  ;;  %v110_v58 = vsel %vm86_vm2, %v34_v48, 0.0 }
   0x9   :  { %v160_v41 = vadd.f32 %v159_v32, %v158_v35 }
   0xa   :  { %v95_v19 = vadd.f32 %v94_v14, %v93_v16 }
   0xb   :  { %v162_v47 = vadd.f32 %v161_v38, %v160_v41 }
   0xc   :  { %v97_v23 = vadd.f32 %v96_v17, %v95_v19 }
   0xd   :  { %v164_v53 = vadd.f32 %v163_v44, %v162_v47 }
   0xe   :  { %v99_v30 = vadd.f32 %v98_v20, %v97_v23 }
   0xf   :  { %v166_v59 = vadd.f32 %v165_v50, %v164_v53 }
  0x10   :  { %v101_v37 = vadd.f32 %v100_v27, %v99_v30 }
  0x12   :  { %v103_v43 = vadd.f32 %v102_v34, %v101_v37 }
  0x14   :  { %v105_v49 = vadd.f32 %v104_v40, %v103_v43 }
  0x16   :  { %v107_v55 = vadd.f32 %v106_v46, %v105_v49 }
  0x17   :  { %8 = vsyncpa [#allocation4], 0  ;;  %v36_v60 = vld [vmem:[%s607_s0 + $0x70] sm:$0xff]  ;;  %v169_v62 = vsel %vm86_vm2, %v61_v51, 0.0  ;;  %v63_v63 = vld [vmem:[%s607_s0 + $0x148] sm:$0xff]  ;;  %v112_v0 = vsel %vm86_vm2, %v35_v54, 0.0  ;;  %v168_v1 = vadd.f32 %v167_v56, %v166_v59 }
  0x18   :  { %v109_v61 = vadd.f32 %v108_v52, %v107_v55  ;;  %v37_v2 = vld [vmem:[%s607_s0 + $0x78] sm:$0xff]  ;;  %v171_v4 = vsel %vm86_vm2, %v62_v57, 0.0  ;;  %v64_v5 = vld [vmem:[%s607_s0 + $0x150] sm:$0xff]  ;;  %v114_v6 = vsel %vm86_vm2, %v36_v60, 0.0  ;;  %v38_v8 = vld [vmem:[%s607_s0 + $0x80] sm:$0xff]  ;;  %v173_v10 = vsel %vm86_vm2, %v63_v63, 0.0 }
  0x19   :  { %v170_v7 = vadd.f32 %v169_v62, %v168_v1  ;;  %v65_v11 = vld [vmem:[%s607_s0 + $0x158] sm:$0xff]  ;;  %v116_v12 = vsel %vm86_vm2, %v37_v2, 0.0  ;;  %v39_v14 = vld [vmem:[%s607_s0 + $0x88] sm:$0xff]  ;;  %v175_v16 = vsel %vm86_vm2, %v64_v5, 0.0  ;;  %v66_v17 = vld [vmem:[%s607_s0 + $0x160] sm:$0xff]  ;;  %v118_v18 = vsel %vm86_vm2, %v38_v8, 0.0 }
  0x1a   :  { %v111_v3 = vadd.f32 %v110_v58, %v109_v61  ;;  %v40_v20 = vld [vmem:[%s607_s0 + $0x90] sm:$0xff]  ;;  %v177_v22 = vsel %vm86_vm2, %v65_v11, 0.0  ;;  %v67_v23 = vld [vmem:[%s607_s0 + $0x168] sm:$0xff]  ;;  %v120_v24 = vsel %vm86_vm2, %v39_v14, 0.0  ;;  %v41_v26 = vld [vmem:[%s607_s0 + $0x98] sm:$0xff]  ;;  %v179_v28 = vsel %vm86_vm2, %v66_v17, 0.0 }
  0x1b   :  { %v172_v13 = vadd.f32 %v171_v4, %v170_v7  ;;  %v68_v29 = vld [vmem:[%s607_s0 + $0x170] sm:$0xff]  ;;  %v122_v30 = vsel %vm86_vm2, %v40_v20, 0.0  ;;  %v42_v32 = vld [vmem:[%s607_s0 + $0xa0] sm:$0xff]  ;;  %v181_v34 = vsel %vm86_vm2, %v67_v23, 0.0  ;;  %v69_v35 = vld [vmem:[%s607_s0 + $0x178] sm:$0xff]  ;;  %v124_v36 = vsel %vm86_vm2, %v41_v26, 0.0 }
  0x1c   :  { %v113_v9 = vadd.f32 %v112_v0, %v111_v3  ;;  %v43_v38 = vld [vmem:[%s607_s0 + $0xa8] sm:$0xff]  ;;  %v183_v40 = vsel %vm86_vm2, %v68_v29, 0.0  ;;  %v70_v41 = vld [vmem:[%s607_s0 + $0x180] sm:$0xff]  ;;  %v126_v42 = vsel %vm86_vm2, %v42_v32, 0.0  ;;  %v44_v44 = vld [vmem:[%s607_s0 + $0xb0] sm:$0xff]  ;;  %v185_v46 = vsel %vm86_vm2, %v69_v35, 0.0 }
  0x1d   :  { %v174_v19 = vadd.f32 %v173_v10, %v172_v13  ;;  %v71_v47 = vld [vmem:[%s607_s0 + $0x188] sm:$0xff]  ;;  %v128_v48 = vsel %vm86_vm2, %v43_v38, 0.0  ;;  %v45_v50 = vld [vmem:[%s607_s0 + $0xb8] sm:$0xff]  ;;  %v187_v52 = vsel %vm86_vm2, %v70_v41, 0.0  ;;  %v72_v53 = vld [vmem:[%s607_s0 + $0x190] sm:$0xff]  ;;  %v130_v54 = vsel %vm86_vm2, %v44_v44, 0.0 }
  0x1e   :  { %v115_v15 = vadd.f32 %v114_v6, %v113_v9  ;;  %v46_v56 = vld [vmem:[%s607_s0 + $0xc0] sm:$0xff]  ;;  %v189_v58 = vsel %vm86_vm2, %v71_v47, 0.0  ;;  %v73_v59 = vld [vmem:[%s607_s0 + $0x198] sm:$0xff]  ;;  %v132_v60 = vsel %vm86_vm2, %v45_v50, 0.0  ;;  %v47_v62 = vld [vmem:[%s607_s0 + $0xc8] sm:$0xff]  ;;  %v191_v0 = vsel %vm86_vm2, %v72_v53, 0.0 }
  0x1f   :  { %v176_v25 = vadd.f32 %v175_v16, %v174_v19  ;;  %v74_v1 = vld [vmem:[%s607_s0 + $0x1a0] sm:$0xff]  ;;  %v134_v2 = vsel %vm86_vm2, %v46_v56, 0.0  ;;  %v48_v4 = vld [vmem:[%s607_s0 + $0xd0] sm:$0xff]  ;;  %v193_v6 = vsel %vm86_vm2, %v73_v59, 0.0  ;;  %v75_v7 = vld [vmem:[%s607_s0 + $0x1a8] sm:$0xff]  ;;  %v136_v8 = vsel %vm86_vm2, %v47_v62, 0.0 }
  0x20   :  { %v117_v21 = vadd.f32 %v116_v12, %v115_v15  ;;  %v49_v10 = vld [vmem:[%s607_s0 + $0xd8] sm:$0xff]  ;;  %v195_v12 = vsel %vm86_vm2, %v74_v1, 0.0  ;;  %v76_v13 = vld [vmem:[%s607_s0 + $0x1b0] sm:$0xff]  ;;  %v138_v14 = vsel %vm86_vm2, %v48_v4, 0.0  ;;  %v50_v16 = vld [vmem:[%s607_s0 + $0xe0] sm:$0xff]  ;;  %vm227_vm3 = vcmask 1041409  }
  0x21   :  { %v178_v31 = vadd.f32 %v177_v22, %v176_v25  ;;  %v77_v19 = vld [vmem:[%s607_s0 + $0x1b8] sm:$0xff]  ;;  %v140_v20 = vsel %vm86_vm2, %v49_v10, 0.0  ;;  %v51_v22 = vld [vmem:[%s607_s0 + $0xe8] sm:$0xff]  ;;  %v78_v25 = vld [vmem:[%s607_s0 + $0x1c0] sm:$0xff]  ;;  %v142_v26 = vsel %vm86_vm2, %v50_v16, 0.0  ;;  %s318_s30 = smov [#allocation3]  }
  0x22   :  { %v119_v27 = vadd.f32 %v118_v18, %v117_v21  ;;  %v197_v18 = vsel %vm86_vm2, %v75_v7, 0.0  ;;  %v144_v32 = vsel %vm86_vm2, %v51_v22, 0.0  ;;  %v82_v47 = vld [vmem:[%s607_s0 + $0x1e0] sm:$0xff]  ;;  %s275_s4 = sshll.u32 %s318_s30, 4  ;;  %s277_s7 = sshll.u32 %s610_s3, 4  ;;  %s276_s4 = int_to_ptr.vmem [resolvable:$true] %s275_s4  ;;  %s278_s7 = int_to_ptr.hbm [resolvable:$true] %s277_s7 }
  0x23   :  { %v180_v37 = vadd.f32 %v179_v28, %v178_v31  ;;  %v52_v28 = vld [vmem:[%s607_s0 + $0xf0] sm:$0xff]  ;;  %v79_v31 = vld [vmem:[%s607_s0 + $0x1c8] sm:$0xff]  ;;  %v290_v16 = vld [vmem:[%s609_s2] ss:$0 sm:$0xff] }
  0x24   :  { %v121_v33 = vadd.f32 %v120_v24, %v119_v27  ;;  %v199_v24 = vsel %vm86_vm2, %v76_v13, 0.0  ;;  %v146_v38 = vsel %vm86_vm2, %v52_v28, 0.0  ;;  %v205_v41 = vsel %vm86_vm2, %v79_v31, 0.0 }
  0x25   :  { %v182_v43 = vadd.f32 %v181_v34, %v180_v37  ;;  %v53_v34 = vld [vmem:[%s607_s0 + $0xf8] sm:$0xff]  ;;  %v80_v37 = vld [vmem:[%s607_s0 + $0x1d0] sm:$0xff] }
  0x26   :  { %v123_v39 = vadd.f32 %v122_v30, %v121_v33  ;;  %v201_v30 = vsel %vm86_vm2, %v77_v19, 0.0 }
  0x27   :  { %v184_v49 = vadd.f32 %v183_v40, %v182_v43  ;;  %v148_v43 = vsel %vm86_vm2, %v53_v34, 0.0 }
  0x28   :  { %v125_v45 = vadd.f32 %v124_v36, %v123_v39  ;;  %v203_v36 = vsel %vm86_vm2, %v78_v25, 0.0 }
  0x29   :  { %v186_v55 = vadd.f32 %v185_v46, %v184_v49  ;;  %v207_v46 = vsel %vm86_vm2, %v80_v37, 0.0 }
  0x2a   :  { %v127_v51 = vadd.f32 %v126_v42, %v125_v45  ;;  %v81_v42 = vld [vmem:[%s607_s0 + $0x1d8] sm:$0xff] }
  0x2b   :  { %v188_v61 = vadd.f32 %v187_v52, %v186_v55  ;;  %v209_v50 = vsel %vm86_vm2, %v81_v42, 0.0  ;;  %v84_v55 = vld [vmem:[%s607_s0 + $0x1f0] sm:$0xff] }
  0x2c   :  { %v129_v57 = vadd.f32 %v128_v48, %v127_v51  ;;  %v83_v51 = vld [vmem:[%s607_s0 + $0x1e8] sm:$0xff] }
  0x2d   :  { %v190_v3 = vadd.f32 %v189_v58, %v188_v61  ;;  %v85_v58 = vld [vmem:[%s607_s0 + $0x1f8] sm:$0xff]  ;;  %v215_v61 = vsel %vm86_vm2, %v84_v55, 0.0 }
  0x2e   :  { %v131_v63 = vadd.f32 %v130_v54, %v129_v57  ;;  %v211_v54 = vsel %vm86_vm2, %v82_v47, 0.0  ;;  %v213_v57 = vsel %vm86_vm2, %v83_v51, 0.0 }
  0x2f   :  { %v192_v9 = vadd.f32 %v191_v0, %v190_v3 }
  0x30   :  { %v133_v5 = vadd.f32 %v132_v60, %v131_v63  ;;  %v217_v63 = vsel %vm86_vm2, %v85_v58, 0.0 }
  0x31   :  { %v194_v15 = vadd.f32 %v193_v6, %v192_v9 }
  0x32   :  { %v135_v11 = vadd.f32 %v134_v2, %v133_v5 }
  0x33   :  { %v196_v21 = vadd.f32 %v195_v12, %v194_v15 }
  0x34   :  { %v137_v17 = vadd.f32 %v136_v8, %v135_v11  ;;  %v21_v11 = vld [vmem:[#allocation2] sm:$0x3] }
  0x35   :  { %v198_v27 = vadd.f32 %v197_v18, %v196_v21 }
  0x36   :  { %v139_v23 = vadd.f32 %v138_v14, %v137_v17 }
  0x37   :  { %v200_v33 = vadd.f32 %v199_v24, %v198_v27 }
  0x38   :  { %v141_v29 = vadd.f32 %v140_v20, %v139_v23 }
  0x39   :  { %v202_v39 = vadd.f32 %v201_v30, %v200_v33 }
  0x3a   :  { %v143_v35 = vadd.f32 %v142_v26, %v141_v29 }
  0x3b   :  { %v204_v44 = vadd.f32 %v203_v36, %v202_v39 }
  0x3c   :  { %v145_v40 = vadd.f32 %v144_v32, %v143_v35 }
  0x3d   :  { %v206_v48 = vadd.f32 %v205_v41, %v204_v44 }
  0x3e   :  { %v147_v45 = vadd.f32 %v146_v38, %v145_v40 }
  0x3f   :  { %v208_v52 = vadd.f32 %v207_v46, %v206_v48 }
  0x40   :  { %v149_v49 = vadd.f32 %v148_v43, %v147_v45 }
  0x41   :  { %v210_v56 = vadd.f32 %v209_v50, %v208_v52 }
  0x42   :  { %v150_v53 = vrot.slane %v149_v49, 4 }
  0x43   :  { %v212_v60 = vadd.f32 %v211_v54, %v210_v56 }
  0x44   :  { %v151_v59 = vadd.f32 %v150_v53, %v149_v49 }
  0x45   :  { %v214_v62 = vadd.f32 %v213_v57, %v212_v60 }
  0x46   :  { %v152_v0 = vrot.slane %v151_v59, 2 }
  0x47   :  { %v216_v1 = vadd.f32 %v215_v61, %v214_v62 }
  0x48   :  { %v153_v3 = vadd.f32 %v152_v0, %v151_v59 }
  0x49   :  { %v218_v2 = vadd.f32 %v217_v63, %v216_v1 }
  0x4a   :  { %v154_v6 = vrot.slane %v153_v3, 1 }
  0x4b   :  { %v219_v4 = vrot.slane %v218_v2, 4 }
  0x4c   :  { %v155_v9 = vadd.f32 %v154_v6, %v153_v3 }
  0x4d   :  { %v220_v5 = vadd.f32 %v219_v4, %v218_v2 }
  0x4f   :  { %v221_v7 = vrot.slane %v220_v5, 2 }
  0x51   :  { %v222_v8 = vadd.f32 %v221_v7, %v220_v5 }
  0x53   :  { %v223_v10 = vrot.slane %v222_v8, 1 }
  0x55   :  { %v224_v12 = vadd.f32 %v223_v10, %v222_v8 }
  0x57   :  { %v228_v13 = vsel %vm227_vm3, %v224_v12, %v155_v9 }
  0x58   :  { %v230_v14 = vadd.f32 %v228_v13, %v21_v11 }
  0x5a   :  { %232 = vst.msk [vmem:[#allocation2] sm:$0x3] %vm19_vm1, %v230_v14 }
  0x61   :  { %v236_v15 = vld [vmem:[#allocation2] sm:$0x3] }
  0x62   :  { %287 = vmatmul.msk.f32.vlgmr.msra.gmra.mxu0 %vm86_vm2, %v236_v15 }
  0xdf   :  { %v266_v17 = vpop.f32.mrf.mxu0 }
  0xe0   :  { %v267_v18 = vadd.f32 %v290_v16, %v266_v17 }
  0xe2   :  { %269 = vst [vmem:[#allocation3] sm:$0x3] %v267_v18 }
  0xe3   :  { %280 = dma.vmem_to_hbm [thread:$0]  %s276_s4, 32, %s278_s7, [#allocation4]  }
  0xe4   :  { %315 = dma.done.wait [#allocation4], 32  }
  0xe5   :  { %316 = vsyncadd [#allocation4], 4294967264 }
  0xe6   :  { %285 = vsyncpa [#allocation4], 1 }

</bundles_post_ra>
